<compile_context>
chip_gen: v6e
topology: v6e:2x2x1
jax: 0.10.0
libtpu: 0.0.40
codegen_flags: <defaults>
</compile_context>

<pallas_src>
import jax
import jax.numpy as jnp
from jax.experimental import pallas as pl
from jax.experimental.pallas import tpu as pltpu

LN_EPS = 1e-5  # torch.nn.LayerNorm default


def toy_model_kernel(x_ref, w1_ref, gamma_ref, beta_ref, w2_ref, b2_ref, o_ref):
    x = x_ref[...]          # [TB, in_features]       f32
    w1 = w1_ref[...]        # [in_features, hidden]   f32 (pre-transposed in wrapper)
    w2 = w2_ref[...]        # [hidden, out_features]  f32 (pre-transposed in wrapper)
    gamma = gamma_ref[...]  # [1, hidden]
    beta = beta_ref[...]    # [1, hidden]
    b2 = b2_ref[...]        # [1, out_features]

    # fc1 (no bias) + ReLU — RHS already K-major, direct MXU push, f32 accumulate.
    h = jnp.dot(x, w1, preferred_element_type=jnp.float32)       # [TB, hidden]
    h = jnp.maximum(h, 0.0)

    # LayerNorm over the hidden (last) axis, affine params applied.
    mean = jnp.mean(h, axis=-1, keepdims=True)                    # [TB, 1]
    centered = h - mean
    var = jnp.mean(centered * centered, axis=-1, keepdims=True)   # [TB, 1]
    inv = jax.lax.rsqrt(var + LN_EPS)                             # EUP
    h_norm = centered * inv * gamma + beta                        # [TB, hidden]

    # fc2 (with bias).
    out = jnp.dot(h_norm, w2, preferred_element_type=jnp.float32) + b2  # [TB, out]
    o_ref[...] = out.astype(o_ref.dtype)


def _round_up(n, m):
    return ((n + m - 1) // m) * m


def toy_model_forward(x, w1, ln_gamma, ln_beta, w2, b2, *, block_batch=512):
    """x: [B, in_features] f32.

    PyTorch-layout parameters:
      w1: [hidden, in_features]  (fc1.weight, no bias)
      ln_gamma, ln_beta: [hidden]
      w2: [out_features, hidden] (fc2.weight), b2: [out_features] (fc2.bias)

    Returns [B, out_features] f32.
    """
    B, in_features = x.shape
    hidden = w1.shape[0]
    out_features = w2.shape[0]

    # Layout plumbing done once in the wrapper (not per grid step inside the kernel):
    w1_t = jnp.transpose(w1)                 # [in_features, hidden]
    w2_t = jnp.transpose(w2)                 # [hidden, out_features]
    gamma2d = ln_gamma.reshape(1, hidden)
    beta2d = ln_beta.reshape(1, hidden)
    b2_2d = b2.reshape(1, out_features)

    # Batch tile: as large as sensible, sublane-aligned (multiple of 8).
    tb = min(block_batch, _round_up(B, 8))
    padded_B = _round_up(B, tb)
    if padded_B != B:
        x = jnp.pad(x, ((0, padded_B - B), (0, 0)))
    grid = (padded_B // tb,)

    cost = pl.CostEstimate(
        flops=2 * padded_B * (in_features * hidden + hidden * out_features),
        transcendentals=padded_B,  # one rsqrt per row
        bytes_accessed=4 * (padded_B * (in_features + out_features)
                            + in_features * hidden + hidden * out_features),
    )

    out = pl.pallas_call(
        toy_model_kernel,
        out_shape=jax.ShapeDtypeStruct((padded_B, out_features), jnp.float32),
        grid=grid,
        in_specs=[
            # x: tiled over batch, double-buffered by the BlockSpec pipeline.
            pl.BlockSpec((tb, in_features), lambda i: (i, 0)),
            # weights / LN params / bias: full blocks, constant index -> VMEM-resident.
            pl.BlockSpec((in_features, hidden), lambda i: (0, 0)),
            pl.BlockSpec((1, hidden), lambda i: (0, 0)),
            pl.BlockSpec((1, hidden), lambda i: (0, 0)),
            pl.BlockSpec((hidden, out_features), lambda i: (0, 0)),
            pl.BlockSpec((1, out_features), lambda i: (0, 0)),
        ],
        out_specs=pl.BlockSpec((tb, out_features), lambda i: (i, 0)),
        compiler_params=pltpu.CompilerParams(
            dimension_semantics=("parallel",),      # batch shards across TCs on v7x
            vmem_limit_bytes=32 * 1024 * 1024,      # safe on v7x (64 MiB) and v5e/v6e
        ),
        cost_estimate=cost,
    )(x, w1_t, gamma2d, beta2d, w2_t, b2_2d)

    if padded_B != B:
        out = out[:B]
    return out


if __name__ == "__main__":
    # Small shapes consistent with the module: hidden is fixed at 10 by ToyModel.
    # batch=256 with block_batch=128 -> grid of 2 (exercises pipelining / both TCs on v7x).
    batch = 256
    in_features = 32
    hidden = 10
    out_features = 16

    key = jax.random.PRNGKey(0)
    kx, kw1, kw2, kb2 = jax.random.split(key, 4)

    x = jax.random.normal(kx, (batch, in_features), dtype=jnp.float32)

    # Deterministic synthetic parameters (PyTorch-layout weights).
    w1 = jax.random.normal(kw1, (hidden, in_features), dtype=jnp.float32) * 0.1    # fc1.weight
    ln_gamma = jnp.ones((hidden,), dtype=jnp.float32)                               # ln.weight
    ln_beta = jnp.zeros((hidden,), dtype=jnp.float32)                               # ln.bias
    w2 = jax.random.normal(kw2, (out_features, hidden), dtype=jnp.float32) * 0.1    # fc2.weight
    b2 = jax.random.normal(kb2, (out_features,), dtype=jnp.float32) * 0.1           # fc2.bias

    out = toy_model_forward(x, w1, ln_gamma, ln_beta, w2, b2, block_batch=128)
    out = jax.block_until_ready(out)

    # Reference check in plain JAX (same semantics as the PyTorch forward).
    h_ref = jnp.maximum(x @ w1.T, 0.0)
    mu = jnp.mean(h_ref, axis=-1, keepdims=True)
    var = jnp.mean((h_ref - mu) ** 2, axis=-1, keepdims=True)
    h_ref = (h_ref - mu) / jnp.sqrt(var + LN_EPS) * ln_gamma + ln_beta
    ref = h_ref @ w2.T + b2
    assert out.shape == ref.shape, "shape mismatch vs reference"
    assert jnp.allclose(out, ref, atol=1e-4, rtol=1e-4), "mismatch vs reference"

    # TODO(synk): the print(x.dtype) debug statements in the PyTorch forward are omitted
    # (no functional effect on the computation).
    print("KERNEL_OK")
</pallas_src>

<mosaic_0001>
module attributes {stable_mosaic.version = 11 : i64} {
  func.func @toy_model_kernel(%arg0: i32, %arg1: memref<128x32xf32, #tpu.memory_space<vmem>>, %arg2: memref<32x10xf32, #tpu.memory_space<vmem>>, %arg3: memref<1x10xf32, #tpu.memory_space<vmem>>, %arg4: memref<1x10xf32, #tpu.memory_space<vmem>>, %arg5: memref<10x16xf32, #tpu.memory_space<vmem>>, %arg6: memref<1x16xf32, #tpu.memory_space<vmem>>, %arg7: memref<128x16xf32, #tpu.memory_space<vmem>>) attributes {dimension_semantics = [#tpu.dimension_semantics<parallel>], iteration_bounds = array<i64: 2>, scalar_prefetch = 0 : i64, scratch_operands = 0 : i64, tpu.core_type = #tpu.core_type<tc>, window_params = [{transform_indices = @transform_0, window_bounds = array<i64: 128, 32>}, {pipeline_mode = #tpu.pipeline_mode<synchronous>, transform_indices = @transform_1, window_bounds = array<i64: 32, 10>}, {pipeline_mode = #tpu.pipeline_mode<synchronous>, transform_indices = @transform_2, window_bounds = array<i64: 1, 10>}, {pipeline_mode = #tpu.pipeline_mode<synchronous>, transform_indices = @transform_3, window_bounds = array<i64: 1, 10>}, {pipeline_mode = #tpu.pipeline_mode<synchronous>, transform_indices = @transform_4, window_bounds = array<i64: 10, 16>}, {pipeline_mode = #tpu.pipeline_mode<synchronous>, transform_indices = @transform_5, window_bounds = array<i64: 1, 16>}, {transform_indices = @transform_6, window_bounds = array<i64: 128, 16>}]} {
    %c0 = arith.constant 0 : index
    %c0_0 = arith.constant 0 : index
    %0 = vector.load %arg1[%c0, %c0_0] : memref<128x32xf32, #tpu.memory_space<vmem>>, vector<128x32xf32>
    %c0_1 = arith.constant 0 : index
    %c0_2 = arith.constant 0 : index
    %1 = vector.load %arg2[%c0_1, %c0_2] : memref<32x10xf32, #tpu.memory_space<vmem>>, vector<32x10xf32>
    %c0_3 = arith.constant 0 : index
    %c0_4 = arith.constant 0 : index
    %2 = vector.load %arg5[%c0_3, %c0_4] : memref<10x16xf32, #tpu.memory_space<vmem>>, vector<10x16xf32>
    %c0_5 = arith.constant 0 : index
    %c0_6 = arith.constant 0 : index
    %3 = vector.load %arg3[%c0_5, %c0_6] : memref<1x10xf32, #tpu.memory_space<vmem>>, vector<1x10xf32>
    %c0_7 = arith.constant 0 : index
    %c0_8 = arith.constant 0 : index
    %4 = vector.load %arg4[%c0_7, %c0_8] : memref<1x10xf32, #tpu.memory_space<vmem>>, vector<1x10xf32>
    %c0_9 = arith.constant 0 : index
    %c0_10 = arith.constant 0 : index
    %5 = vector.load %arg6[%c0_9, %c0_10] : memref<1x16xf32, #tpu.memory_space<vmem>>, vector<1x16xf32>
    %cst = arith.constant dense<0.000000e+00> : vector<128x10xf32>
    %6 = tpu.matmul %0, %1, %cst {dimension_numbers = #tpu.dot_dimension_numbers<[1], [0], [0], [1], [0, 0, 1, 1], [], []>} : vector<128x32xf32>, vector<32x10xf32>, vector<128x10xf32> -> vector<128x10xf32>
    %cst_11 = arith.constant 0.000000e+00 : f32
    %7 = vector.broadcast %cst_11 : f32 to vector<128x10xf32>
    %8 = arith.maximumf %6, %7 : vector<128x10xf32>
    %cst_12 = arith.constant dense<0.000000e+00> : vector<128xf32>
    %9 = vector.multi_reduction <add>, %8, %cst_12 [1] : vector<128x10xf32> to vector<128xf32>
    %10 = vector.shape_cast %9 : vector<128xf32> to vector<128x1xf32>
    %cst_13 = arith.constant 1.000000e+01 : f32
    %11 = vector.broadcast %cst_13 : f32 to vector<128x1xf32>
    %12 = arith.divf %10, %11 : vector<128x1xf32>
    %13 = vector.broadcast %12 : vector<128x1xf32> to vector<128x10xf32>
    %14 = arith.subf %8, %13 : vector<128x10xf32>
    %15 = arith.mulf %14, %14 : vector<128x10xf32>
    %cst_14 = arith.constant dense<0.000000e+00> : vector<128xf32>
    %16 = vector.multi_reduction <add>, %15, %cst_14 [1] : vector<128x10xf32> to vector<128xf32>
    %17 = vector.shape_cast %16 : vector<128xf32> to vector<128x1xf32>
    %cst_15 = arith.constant 1.000000e+01 : f32
    %18 = vector.broadcast %cst_15 : f32 to vector<128x1xf32>
    %19 = arith.divf %17, %18 : vector<128x1xf32>
    %cst_16 = arith.constant 9.99999974E-6 : f32
    %20 = vector.broadcast %cst_16 : f32 to vector<128x1xf32>
    %21 = arith.addf %19, %20 : vector<128x1xf32>
    %22 = math.rsqrt %21 : vector<128x1xf32>
    %23 = vector.broadcast %22 : vector<128x1xf32> to vector<128x10xf32>
    %24 = arith.mulf %14, %23 : vector<128x10xf32>
    %25 = vector.broadcast %3 : vector<1x10xf32> to vector<128x10xf32>
    %26 = arith.mulf %24, %25 : vector<128x10xf32>
    %27 = vector.broadcast %4 : vector<1x10xf32> to vector<128x10xf32>
    %28 = arith.addf %26, %27 : vector<128x10xf32>
    %cst_17 = arith.constant dense<0.000000e+00> : vector<128x16xf32>
    %29 = tpu.matmul %28, %2, %cst_17 {dimension_numbers = #tpu.dot_dimension_numbers<[1], [0], [0], [1], [0, 0, 1, 1], [], []>} : vector<128x10xf32>, vector<10x16xf32>, vector<128x16xf32> -> vector<128x16xf32>
    %30 = vector.broadcast %5 : vector<1x16xf32> to vector<128x16xf32>
    %31 = arith.addf %29, %30 : vector<128x16xf32>
    %c0_18 = arith.constant 0 : index
    %c0_19 = arith.constant 0 : index
    %32 = vector.load %arg7[%c0_18, %c0_19] : memref<128x16xf32, #tpu.memory_space<vmem>>, vector<128x16xf32>
    tpu.vector_store %arg7[%c0_18, %c0_19], %31 {strides = array<i32>} : memref<128x16xf32, #tpu.memory_space<vmem>>, vector<128x16xf32>,
    return
  }
  func.func @transform_0(%arg0: i32) -> (i32, i32) {
    %c0_i32 = arith.constant 0 : i32
    %c0_i32_0 = arith.constant 0 : i32
    return %arg0, %c0_i32 : i32, i32
  }
  func.func @transform_1(%arg0: i32) -> (i32, i32) {
    %c0_i32 = arith.constant 0 : i32
    %c0_i32_0 = arith.constant 0 : i32
    %c0_i32_1 = arith.constant 0 : i32
    return %c0_i32, %c0_i32_0 : i32, i32
  }
  func.func @transform_2(%arg0: i32) -> (i32, i32) {
    %c0_i32 = arith.constant 0 : i32
    %c0_i32_0 = arith.constant 0 : i32
    %c0_i32_1 = arith.constant 0 : i32
    return %c0_i32, %c0_i32_0 : i32, i32
  }
  func.func @transform_3(%arg0: i32) -> (i32, i32) {
    %c0_i32 = arith.constant 0 : i32
    %c0_i32_0 = arith.constant 0 : i32
    %c0_i32_1 = arith.constant 0 : i32
    return %c0_i32, %c0_i32_0 : i32, i32
  }
  func.func @transform_4(%arg0: i32) -> (i32, i32) {
    %c0_i32 = arith.constant 0 : i32
    %c0_i32_0 = arith.constant 0 : i32
    %c0_i32_1 = arith.constant 0 : i32
    return %c0_i32, %c0_i32_0 : i32, i32
  }
  func.func @transform_5(%arg0: i32) -> (i32, i32) {
    %c0_i32 = arith.constant 0 : i32
    %c0_i32_0 = arith.constant 0 : i32
    %c0_i32_1 = arith.constant 0 : i32
    return %c0_i32, %c0_i32_0 : i32, i32
  }
  func.func @transform_6(%arg0: i32) -> (i32, i32) {
    %c0_i32 = arith.constant 0 : i32
    %c0_i32_0 = arith.constant 0 : i32
    return %arg0, %c0_i32 : i32, i32
  }
}

</mosaic_0001>

<bundles_post_ra>
// kernel: tpu_custom_call.1
= control target key start
LH: loop header
LB: loop body
LE: loop exit
PB: predicated region body
PF: predicated region fallthrough
CT: control target
= control target key end

     0   :  { %s1248_s21 = smov 0   ;;  %s1643_s0 = inlined_call_operand.vmem [shape: f32[256,32], index: 0, kind: input, shape index: {}]   ;;  %s1644_s1 = inlined_call_operand.vmem [shape: f32[32,10], index: 1, kind: input, shape index: {}]   ;;  %s1645_s2 = inlined_call_operand.vmem [shape: f32[1,10], index: 2, kind: input, shape index: {}]   ;;  %s1646_s3 = inlined_call_operand.vmem [shape: f32[1,10], index: 3, kind: input, shape index: {}]   ;;  %s1647_s4 = inlined_call_operand.vmem [shape: f32[10,16], index: 4, kind: input, shape index: {}]   ;;  %s1648_s5 = inlined_call_operand.vmem [shape: f32[1,16], index: 5, kind: input, shape index: {}]   ;;  %s1649_s6 = inlined_call_operand.vmem [shape: f32[256,16], index: 6, kind: output, shape index: {}]  }
   0x1 LB: > { %s1020_s22 = sadd.s32 4294967295, %s1211_s21   ;;  %p1024_p0 = scmp.ge.s32.totalorder %s1211_s21, 1  ;;  %s1211_s21 = sphi %s1248_s21, %s16_s21  }
   0x2   : > { %p213_p1 = scmp.lt.s32.totalorder %s1211_s21, 3 }
   0x4   : > { %p214_p2 = pnand %p1024_p0, %p213_p1 }
   0x5   : > { %s1025_s27 = sshll.u32 (!%p214_p2), %s1020_s22, 4 }
   0x6   : > { %217 = sbr.rel (%p214_p2) target bundleno = 755 (0x2f3), region = 44  ;;  %p244_p3 = scmp.lt.s32.totalorder (!%p214_p2), %s1025_s27, 31 }
   0xb   : > { %v274_v0 = vld [vmem:[%s1644_s1 + $0x18] sm:$0xff]  ;;  %v273_v1 = vld [vmem:[%s1644_s1 + $0x10] sm:$0xff]  ;;  %v272_v2 = vld [vmem:[%s1644_s1 + $0x8] sm:$0xff]  ;;  %s1651_s27 = smov (!%p244_p3, %s1025_s27), 31  ;;  %vm280_vm0 = vcmask 261120   ;;  %vm490_vm1 = vcmask 80896  }
   0xc   : > { %1105 = vmatprep.subr.mxu0 %v274_v0  ;;  %v271_v3 = vld [vmem:[%s1644_s1] sm:$0xff]  ;;  %s1026_s8 = sshll.u32 %s1651_s27, 3  ;;  %vm798_vm2 = vcmask 1041408   ;;  %vm947_vm3 = vcmask 130048  }
   0xd   : > { %1106 = vmatpush3.msra.mxu0 %v274_v0  ;;  %s1276_s11 = scalar_lea.vmem %s1643_s0, %s1026_s8  ;;  %s1606_s25 = scalar_lea.vmem %s1649_s6, %s1026_s8 }
   0xe   : > { %1107 = vmatprep.subr.mxu0 %v273_v1  ;;  %v255_v4 = vld [vmem:[%s1276_s11] sm:$0xff]  ;;  %v256_v5 = vld [vmem:[%s1276_s11 + $0x8] sm:$0xff]  ;;  %v257_v6 = vld [vmem:[%s1276_s11 + $0x10] sm:$0xff] }
   0xf   : > { %1108 = vmatpush3.msra.mxu0 %v273_v1  ;;  %1113 = vmatprep.mubr.msk.f32.mxu0 %vm280_vm0, %v255_v4  ;;  %v258_v7 = vld [vmem:[%s1276_s11 + $0x18] sm:$0xff]  ;;  %v259_v8 = vld [vmem:[%s1276_s11 + $0x20] sm:$0xff]  ;;  %v260_v9 = vld [vmem:[%s1276_s11 + $0x28] sm:$0xff] }
  0x10   : > { %1109 = vmatprep.subr.mxu0 %v272_v2  ;;  %v261_v10 = vld [vmem:[%s1276_s11 + $0x30] sm:$0xff]  ;;  %v262_v11 = vld [vmem:[%s1276_s11 + $0x38] sm:$0xff]  ;;  %v263_v12 = vld [vmem:[%s1276_s11 + $0x40] sm:$0xff] }
  0x11   : > { %1110 = vmatpush3.msra.mxu0 %v272_v2  ;;  %v264_v13 = vld [vmem:[%s1276_s11 + $0x48] sm:$0xff]  ;;  %v265_v14 = vld [vmem:[%s1276_s11 + $0x50] sm:$0xff]  ;;  %v266_v15 = vld [vmem:[%s1276_s11 + $0x58] sm:$0xff] }
  0x12   : > { %1111 = vmatprep.subr.mxu0 %v271_v3  ;;  %v267_v16 = vld [vmem:[%s1276_s11 + $0x60] sm:$0xff]  ;;  %v268_v17 = vld [vmem:[%s1276_s11 + $0x68] sm:$0xff]  ;;  %v269_v18 = vld [vmem:[%s1276_s11 + $0x70] sm:$0xff] }
  0x13   : > { %1112 = vmatpush3.msra.mxu0 %v271_v3  ;;  %v270_v19 = vld [vmem:[%s1276_s11 + $0x78] sm:$0xff] }
  0x14   : > { %1114 = vmatmul.mubr.msk.f32.vlgmr.msra.gmra.mxu0 %vm280_vm0, %v256_v5 }
  0x15   : > { %1116 = vmatprep.mubr.msk.f32.mxu0 %vm280_vm0, %v257_v6 }
  0x18   : > { %1117 = vmatmul.mubr.msk.f32.gmra.mxu0 %vm280_vm0, %v258_v7 }
  0x19   : > { %1119 = vmatprep.mubr.msk.f32.mxu0 %vm280_vm0, %v259_v8 }
  0x1c   : > { %1120 = vmatmul.mubr.msk.f32.gmra.mxu0 %vm280_vm0, %v260_v9 }
  0x1d   : > { %1122 = vmatprep.mubr.msk.f32.mxu0 %vm280_vm0, %v261_v10 }
  0x20   : > { %1123 = vmatmul.mubr.msk.f32.gmra.mxu0 %vm280_vm0, %v262_v11 }
  0x21   : > { %1125 = vmatprep.mubr.msk.f32.mxu0 %vm280_vm0, %v263_v12 }
  0x24   : > { %1126 = vmatmul.mubr.msk.f32.gmra.mxu0 %vm280_vm0, %v264_v13 }
  0x25   : > { %1128 = vmatprep.mubr.msk.f32.mxu0 %vm280_vm0, %v265_v14 }
  0x28   : > { %1129 = vmatmul.mubr.msk.f32.gmra.mxu0 %vm280_vm0, %v266_v15 }
  0x29   : > { %1131 = vmatprep.mubr.msk.f32.mxu0 %vm280_vm0, %v267_v16 }
  0x2c   : > { %1132 = vmatmul.mubr.msk.f32.gmra.mxu0 %vm280_vm0, %v268_v17 }
  0x2d   : > { %1134 = vmatprep.mubr.msk.f32.mxu0 %vm280_vm0, %v269_v18 }
  0x30   : > { %1135 = vmatmul.mubr.msk.f32.gmra.mxu0 %vm280_vm0, %v270_v19 }
  0xd4   : > { %v1310_v20 = vpop.f32.mrf.mxu0 }
  0xd5   : > { %v475_v24 = vmax.f32 %v1310_v20, 0.0 }
  0xd6   : > { %v1312_v21 = vpop.f32.mrf.mxu0 }
  0xd7   : > { %v474_v22 = vmax.f32 %v1312_v21, 0.0  ;;  %v494_v30 = vsel %vm490_vm1, %v475_v24, 0.0 }
  0xd8   : > { %v1315_v23 = vpop.f32.mrf.mxu0 }
  0xd9   : > { %v491_v25 = vsel %vm490_vm1, %v474_v22, 0.0  ;;  %v477_v29 = vmax.f32 %v1315_v23, 0.0 }
  0xda   : > { %492 = vadd.xlane.f32.xlu0 %v491_v25  ;;  %v1321_v26 = vpop.f32.mrf.mxu0 }
  0xdb   : > { %v476_v27 = vmax.f32 %v1321_v26, 0.0  ;;  %v500_v36 = vsel %vm490_vm1, %v477_v29, 0.0 }
  0xdc   : > { %v1324_v28 = vpop.f32.mrf.mxu0 }
  0xdd   : > { %v497_v31 = vsel %vm490_vm1, %v476_v27, 0.0  ;;  %v479_v35 = vmax.f32 %v1324_v28, 0.0 }
  0xde   : > { %495 = vadd.xlane.f32.xlu0 %v494_v30  ;;  %498 = vadd.xlane.f32.xlu1 %v497_v31  ;;  %v1333_v32 = vpop.f32.mrf.mxu0 }
  0xdf   : > { %v478_v33 = vmax.f32 %v1333_v32, 0.0  ;;  %v506_v42 = vsel %vm490_vm1, %v479_v35, 0.0 }
  0xe0   : > { %v1336_v34 = vpop.f32.mrf.mxu0 }
  0xe1   : > { %v503_v37 = vsel %vm490_vm1, %v478_v33, 0.0  ;;  %v481_v41 = vmax.f32 %v1336_v34, 0.0 }
  0xe2   : > { %501 = vadd.xlane.f32.xlu1 %v500_v36  ;;  %504 = vadd.xlane.f32.xlu0 %v503_v37  ;;  %v1345_v38 = vpop.f32.mrf.mxu0 }
  0xe3   : > { %v480_v39 = vmax.f32 %v1345_v38, 0.0  ;;  %v512_v48 = vsel %vm490_vm1, %v481_v41, 0.0 }
  0xe4   : > { %v1348_v40 = vpop.f32.mrf.mxu0 }
  0xe5   : > { %v509_v43 = vsel %vm490_vm1, %v480_v39, 0.0  ;;  %v483_v47 = vmax.f32 %v1348_v40, 0.0 }
  0xe6   : > { %507 = vadd.xlane.f32.xlu1 %v506_v42  ;;  %510 = vadd.xlane.f32.xlu0 %v509_v43  ;;  %v1357_v44 = vpop.f32.mrf.mxu0 }
  0xe7   : > { %v482_v45 = vmax.f32 %v1357_v44, 0.0  ;;  %v518_v54 = vsel %vm490_vm1, %v483_v47, 0.0 }
  0xe8   : > { %v1360_v46 = vpop.f32.mrf.mxu0 }
  0xe9   : > { %v515_v49 = vsel %vm490_vm1, %v482_v45, 0.0  ;;  %v485_v53 = vmax.f32 %v1360_v46, 0.0 }
  0xea   : > { %513 = vadd.xlane.f32.xlu1 %v512_v48  ;;  %516 = vadd.xlane.f32.xlu0 %v515_v49  ;;  %v1369_v50 = vpop.f32.mrf.mxu0 }
  0xeb   : > { %v484_v51 = vmax.f32 %v1369_v50, 0.0  ;;  %v524_v60 = vsel %vm490_vm1, %v485_v53, 0.0 }
  0xec   : > { %v1372_v52 = vpop.f32.mrf.mxu0 }
  0xed   : > { %v521_v55 = vsel %vm490_vm1, %v484_v51, 0.0  ;;  %v487_v59 = vmax.f32 %v1372_v52, 0.0 }
  0xee   : > { %519 = vadd.xlane.f32.xlu1 %v518_v54  ;;  %522 = vadd.xlane.f32.xlu0 %v521_v55  ;;  %v1381_v56 = vpop.f32.mrf.mxu0 }
  0xef   : > { %v486_v57 = vmax.f32 %v1381_v56, 0.0  ;;  %v530_v1 = vsel %vm490_vm1, %v487_v59, 0.0 }
  0xf0   : > { %v1384_v58 = vpop.f32.mrf.mxu0 }
  0xf1   : > { %v527_v61 = vsel %vm490_vm1, %v486_v57, 0.0  ;;  %v489_v0 = vmax.f32 %v1384_v58, 0.0  ;;  %v275_v58 = vld [vmem:[%s1647_s4] sm:$0xff] }
  0xf2   : > { %525 = vadd.xlane.f32.xlu1 %v524_v60  ;;  %528 = vadd.xlane.f32.xlu0 %v527_v61  ;;  %v1393_v62 = vpop.f32.mrf.mxu0 }
  0xf3   : > { %v488_v63 = vmax.f32 %v1393_v62, 0.0  ;;  %v536_v3 = vsel %vm490_vm1, %v489_v0, 0.0 }
  0xf5   : > { %v533_v2 = vsel %vm490_vm1, %v488_v63, 0.0 }
  0xf6   : > { %531 = vadd.xlane.f32.xlu1 %v530_v1  ;;  %534 = vadd.xlane.f32.xlu0 %v533_v2 }
  0xfa   : > { %537 = vadd.xlane.f32.xlu1 %v536_v3 }
 0x163   : > { %v493_v4 = vpop.xlane.xlu0 %492 }
 0x164   : > { %v540_v5 = vmul.f32 0.1, %v493_v4 }
 0x166   : > { %v1408_v6 = vsub.f32 %v474_v22, %v540_v5 }
 0x167   : > { %v496_v7 = vpop.xlane.xlu0 %495  ;;  %v499_v8 = vpop.xlane.xlu1 %498 }
 0x168   : > { %v541_v9 = vmul.f32 0.1, %v496_v7  ;;  %v542_v10 = vmul.f32 0.1, %v499_v8  ;;  %v572_v11 = vmul.f32 %v1408_v6, %v1408_v6 }
 0x16a   : > { %v1414_v12 = vsub.f32 %v475_v24, %v541_v9  ;;  %v1418_v13 = vsub.f32 %v476_v27, %v542_v10  ;;  %v588_v14 = vsel %vm490_vm1, %v572_v11, 0.0 }
 0x16b   : > { %v502_v15 = vpop.xlane.xlu1 %501  ;;  %v505_v16 = vpop.xlane.xlu0 %504  ;;  %589 = vadd.xlane.f32.xlu0 %v588_v14 }
 0x16c   : > { %v543_v17 = vmul.f32 0.1, %v502_v15  ;;  %v544_v18 = vmul.f32 0.1, %v505_v16  ;;  %v573_v19 = vmul.f32 %v1414_v12, %v1414_v12  ;;  %v574_v21 = vmul.f32 %v1418_v13, %v1418_v13 }
 0x16e   : > { %v1427_v20 = vsub.f32 %v477_v29, %v543_v17  ;;  %v1431_v22 = vsub.f32 %v478_v33, %v544_v18  ;;  %v591_v24 = vsel %vm490_vm1, %v573_v19, 0.0  ;;  %v594_v25 = vsel %vm490_vm1, %v574_v21, 0.0 }
 0x16f   : > { %v508_v26 = vpop.xlane.xlu1 %507  ;;  %v511_v27 = vpop.xlane.xlu0 %510  ;;  %592 = vadd.xlane.f32.xlu1 %v591_v24  ;;  %595 = vadd.xlane.f32.xlu0 %v594_v25 }
 0x170   : > { %v545_v30 = vmul.f32 0.1, %v508_v26  ;;  %v546_v31 = vmul.f32 0.1, %v511_v27  ;;  %v575_v36 = vmul.f32 %v1427_v20, %v1427_v20  ;;  %v576_v23 = vmul.f32 %v1431_v22, %v1431_v22 }
 0x172   : > { %v1441_v29 = vsub.f32 %v479_v35, %v545_v30  ;;  %v1445_v32 = vsub.f32 %v480_v39, %v546_v31  ;;  %v597_v33 = vsel %vm490_vm1, %v575_v36, 0.0  ;;  %v600_v37 = vsel %vm490_vm1, %v576_v23, 0.0  ;;  %v276_v30 = vld [vmem:[%s1647_s4 + $0x8] sm:$0x3] }
 0x173   : > { %v514_v42 = vpop.xlane.xlu1 %513  ;;  %v517_v43 = vpop.xlane.xlu0 %516  ;;  %598 = vadd.xlane.f32.xlu1 %v597_v33  ;;  %601 = vadd.xlane.f32.xlu0 %v600_v37 }
 0x174   : > { %v547_v48 = vmul.f32 0.1, %v514_v42  ;;  %v548_v49 = vmul.f32 0.1, %v517_v43  ;;  %v577_v54 = vmul.f32 %v1441_v29, %v1441_v29  ;;  %v578_v28 = vmul.f32 %v1445_v32, %v1445_v32  ;;  %1137 = vmatprep.subr.msk.mxu1 %vm798_vm2, %v276_v30 }
 0x175   : > { %1138 = vmatpush3.msk.msra.mxu1 %vm798_vm2, %v276_v30 }
 0x176   : > { %v1455_v35 = vsub.f32 %v481_v41, %v547_v48  ;;  %v1459_v38 = vsub.f32 %v482_v45, %v548_v49  ;;  %v603_v39 = vsel %vm490_vm1, %v577_v54, 0.0  ;;  %v606_v55 = vsel %vm490_vm1, %v578_v28, 0.0  ;;  %1139 = vmatprep.subr.mxu1 %v275_v58 }
 0x177   : > { %v520_v60 = vpop.xlane.xlu1 %519  ;;  %v523_v61 = vpop.xlane.xlu0 %522  ;;  %604 = vadd.xlane.f32.xlu1 %v603_v39  ;;  %607 = vadd.xlane.f32.xlu0 %v606_v55 }
 0x178   : > { %v549_v1 = vmul.f32 0.1, %v520_v60  ;;  %v550_v2 = vmul.f32 0.1, %v523_v61  ;;  %v579_v3 = vmul.f32 %v1455_v35, %v1455_v35  ;;  %v580_v34 = vmul.f32 %v1459_v38, %v1459_v38  ;;  %1140 = vmatpush3.msra.mxu1 %v275_v58 }
 0x17a   : > { %v1469_v41 = vsub.f32 %v483_v47, %v549_v1  ;;  %v1473_v44 = vsub.f32 %v484_v51, %v550_v2  ;;  %v609_v45 = vsel %vm490_vm1, %v579_v3, 0.0  ;;  %v612_v4 = vsel %vm490_vm1, %v580_v34, 0.0 }
 0x17b   : > { %v526_v5 = vpop.xlane.xlu1 %525  ;;  %v529_v7 = vpop.xlane.xlu0 %528  ;;  %610 = vadd.xlane.f32.xlu1 %v609_v45  ;;  %613 = vadd.xlane.f32.xlu0 %v612_v4 }
 0x17c   : > { %v551_v8 = vmul.f32 0.1, %v526_v5  ;;  %v552_v9 = vmul.f32 0.1, %v529_v7  ;;  %v581_v10 = vmul.f32 %v1469_v41, %v1469_v41  ;;  %v582_v40 = vmul.f32 %v1473_v44, %v1473_v44 }
 0x17e   : > { %v1483_v47 = vsub.f32 %v485_v53, %v551_v8  ;;  %v1487_v50 = vsub.f32 %v486_v57, %v552_v9  ;;  %v615_v51 = vsel %vm490_vm1, %v581_v10, 0.0  ;;  %v618_v11 = vsel %vm490_vm1, %v582_v40, 0.0  ;;  %v1527_v10 = vld [vmem:[%s1645_s2] ss:$0 sm:$0xff] }
 0x17f   : > { %v532_v14 = vpop.xlane.xlu1 %531  ;;  %616 = vadd.xlane.f32.xlu1 %v615_v51  ;;  %619 = vadd.xlane.f32.xlu0 %v618_v11  ;;  %v535_v15 = vpop.xlane.xlu0 %534 }
 0x180   : > { %v553_v16 = vmul.f32 0.1, %v532_v14  ;;  %v554_v17 = vmul.f32 0.1, %v535_v15  ;;  %v583_v18 = vmul.f32 %v1483_v47, %v1483_v47  ;;  %v584_v46 = vmul.f32 %v1487_v50, %v1487_v50 }
 0x182   : > { %v1497_v53 = vsub.f32 %v487_v59, %v553_v16  ;;  %v1501_v56 = vsub.f32 %v488_v63, %v554_v17  ;;  %v621_v57 = vsel %vm490_vm1, %v583_v18, 0.0  ;;  %v624_v19 = vsel %vm490_vm1, %v584_v46, 0.0  ;;  %v1533_v16 = vld [vmem:[%s1646_s3] ss:$0 sm:$0xff] }
 0x183   : > { %622 = vadd.xlane.f32.xlu1 %v621_v57  ;;  %v538_v21 = vpop.xlane.xlu1 %537  ;;  %625 = vadd.xlane.f32.xlu0 %v624_v19 }
 0x184   : > { %v555_v24 = vmul.f32 0.1, %v538_v21  ;;  %v585_v25 = vmul.f32 %v1497_v53, %v1497_v53  ;;  %v586_v52 = vmul.f32 %v1501_v56, %v1501_v56 }
 0x186   : > { %v1511_v59 = vsub.f32 %v489_v0, %v555_v24  ;;  %v627_v62 = vsel %vm490_vm1, %v585_v25, 0.0  ;;  %v630_v63 = vsel %vm490_vm1, %v586_v52, 0.0 }
 0x187   : > { %628 = vadd.xlane.f32.xlu1 %v627_v62  ;;  %631 = vadd.xlane.f32.xlu0 %v630_v63 }
 0x188   : > { %v587_v26 = vmul.f32 %v1511_v59, %v1511_v59 }
 0x18a   : > { %v633_v27 = vsel %vm490_vm1, %v587_v26, 0.0 }
 0x18b   : > { %634 = vadd.xlane.f32.xlu1 %v633_v27 }
 0x1f4   : > { %v590_v0 = vpop.xlane.xlu0 %589 }
 0x1f5   : > { %v636_v31 = vmul.f32 0.1, %v590_v0 }
 0x1f7   : > { %v652_v36 = vadd.f32 1e-05, %v636_v31 }
 0x1f8   : > { %v593_v23 = vpop.xlane.xlu1 %592  ;;  %v596_v33 = vpop.xlane.xlu0 %595 }
 0x1f9   : > { %1173 = vrsqrt.f32 %v652_v36  ;;  %v637_v37 = vmul.f32 0.1, %v593_v23  ;;  %v638_v42 = vmul.f32 0.1, %v596_v33 }
 0x1fb   : > { %v653_v43 = vadd.f32 1e-05, %v637_v37  ;;  %v654_v48 = vadd.f32 1e-05, %v638_v42 }
 0x1fc   : > { %v599_v49 = vpop.xlane.xlu1 %598  ;;  %v602_v54 = vpop.xlane.xlu0 %601 }
 0x1fd   : > { %1175 = vrsqrt.f32 %v653_v43  ;;  %v639_v28 = vmul.f32 0.1, %v599_v49  ;;  %v640_v39 = vmul.f32 0.1, %v602_v54 }
 0x1fe   : > { %1177 = vrsqrt.f32 %v654_v48 }
 0x1ff   : > { %v655_v55 = vadd.f32 1e-05, %v639_v28  ;;  %v656_v60 = vadd.f32 1e-05, %v640_v39 }
 0x200   : > { %v605_v61 = vpop.xlane.xlu1 %604  ;;  %v608_v1 = vpop.xlane.xlu0 %607 }
 0x201   : > { %1179 = vrsqrt.f32 %v655_v55  ;;  %v641_v2 = vmul.f32 0.1, %v605_v61  ;;  %v642_v3 = vmul.f32 0.1, %v608_v1 }
 0x202   : > { %1181 = vrsqrt.f32 %v656_v60 }
 0x203   : > { %v657_v34 = vadd.f32 1e-05, %v641_v2  ;;  %v658_v45 = vadd.f32 1e-05, %v642_v3 }
 0x204   : > { %v611_v4 = vpop.xlane.xlu1 %610  ;;  %v614_v5 = vpop.xlane.xlu0 %613 }
 0x205   : > { %1183 = vrsqrt.f32 %v657_v34  ;;  %v643_v7 = vmul.f32 0.1, %v611_v4  ;;  %v644_v8 = vmul.f32 0.1, %v614_v5 }
 0x206   : > { %v1174_v9 = vpop.eup %1173  ;;  %1185 = vrsqrt.f32 %v658_v45 }
 0x207   : > { %v659_v40 = vadd.f32 1e-05, %v643_v7  ;;  %v660_v51 = vadd.f32 1e-05, %v644_v8  ;;  %v684_v11 = vmul.f32 %v1174_v9, %v1408_v6 }
 0x208   : > { %v617_v14 = vpop.xlane.xlu1 %616  ;;  %v620_v15 = vpop.xlane.xlu0 %619 }
 0x209   : > { %1187 = vrsqrt.f32 %v659_v40  ;;  %v645_v17 = vmul.f32 0.1, %v617_v14  ;;  %v646_v18 = vmul.f32 0.1, %v620_v15  ;;  %v706_v46 = vmul.f32 %v1527_v10, %v684_v11 }
 0x20a   : > { %v1176_v57 = vpop.eup %1175  ;;  %1189 = vrsqrt.f32 %v660_v51 }
 0x20b   : > { %v1178_v19 = vpop.eup %1177  ;;  %v661_v21 = vadd.f32 1e-05, %v645_v17  ;;  %v662_v24 = vadd.f32 1e-05, %v646_v18  ;;  %v728_v25 = vadd.f32 %v1533_v16, %v706_v46  ;;  %v685_v6 = vmul.f32 %v1176_v57, %v1414_v12 }
 0x20c   : > { %v623_v52 = vpop.xlane.xlu1 %622  ;;  %v626_v62 = vpop.xlane.xlu0 %625  ;;  %v686_v63 = vmul.f32 %v1178_v19, %v1418_v13 }
 0x20d   : > { %1191 = vrsqrt.f32 %v661_v21  ;;  %v647_v26 = vmul.f32 0.1, %v623_v52  ;;  %v648_v27 = vmul.f32 0.1, %v626_v62  ;;  %1141 = vmatprep.mubr.msk.f32.mxu1 %vm490_vm1, %v728_v25  ;;  %v707_v30 = vmul.f32 %v1527_v10, %v685_v6 }
 0x20e   : > { %v1180_v58 = vpop.eup %1179  ;;  %1193 = vrsqrt.f32 %v662_v24  ;;  %v708_v0 = vmul.f32 %v1527_v10, %v686_v63 }
 0x20f   : > { %v1182_v31 = vpop.eup %1181  ;;  %v663_v36 = vadd.f32 1e-05, %v647_v26  ;;  %v664_v23 = vadd.f32 1e-05, %v648_v27  ;;  %v729_v12 = vadd.f32 %v1533_v16, %v707_v30  ;;  %v687_v33 = vmul.f32 %v1180_v58, %v1427_v20 }
 0x210   : > { %v629_v37 = vpop.xlane.xlu1 %628  ;;  %v632_v13 = vpop.xlane.xlu0 %631  ;;  %v730_v42 = vadd.f32 %v1533_v16, %v708_v0  ;;  %v688_v43 = vmul.f32 %v1182_v31, %v1431_v22 }
 0x211   : > { %1195 = vrsqrt.f32 %v663_v36  ;;  %v649_v48 = vmul.f32 0.1, %v629_v37  ;;  %v650_v49 = vmul.f32 0.1, %v632_v13  ;;  %1142 = vmatmul.mubr.msk.f32.vlgmr.msra.gmra.mxu1 %vm490_vm1, %v729_v12  ;;  %v709_v54 = vmul.f32 %v1527_v10, %v687_v33  ;;  %v1047_v12 = vld [vmem:[%s1648_s5] ss:$0 sm:$0xff] }
 0x212   : > { %v1184_v28 = vpop.eup %1183  ;;  %1197 = vrsqrt.f32 %v664_v23  ;;  %1144 = vmatprep.mubr.msk.f32.mxu1 %vm490_vm1, %v730_v42  ;;  %v710_v39 = vmul.f32 %v1527_v10, %v688_v43 }
 0x213   : > { %v1186_v20 = vpop.eup %1185  ;;  %v665_v55 = vadd.f32 1e-05, %v649_v48  ;;  %v666_v60 = vadd.f32 1e-05, %v650_v49  ;;  %v731_v61 = vadd.f32 %v1533_v16, %v709_v54  ;;  %v689_v22 = vmul.f32 %v1184_v28, %v1441_v29 }
 0x214   : > { %v635_v1 = vpop.xlane.xlu1 %634  ;;  %v732_v2 = vadd.f32 %v1533_v16, %v710_v39  ;;  %v690_v3 = vmul.f32 %v1186_v20, %v1445_v32 }
 0x215   : > { %1199 = vrsqrt.f32 %v665_v55  ;;  %v651_v34 = vmul.f32 0.1, %v635_v1  ;;  %1145 = vmatmul.mubr.msk.f32.gmra.mxu1 %vm490_vm1, %v731_v61  ;;  %v711_v45 = vmul.f32 %v1527_v10, %v689_v22 }
 0x216   : > { %v1188_v4 = vpop.eup %1187  ;;  %1201 = vrsqrt.f32 %v666_v60  ;;  %1147 = vmatprep.mubr.msk.f32.mxu1 %vm490_vm1, %v732_v2  ;;  %v712_v5 = vmul.f32 %v1527_v10, %v690_v3 }
 0x217   : > { %v1190_v7 = vpop.eup %1189  ;;  %v667_v8 = vadd.f32 1e-05, %v651_v34  ;;  %v733_v29 = vadd.f32 %v1533_v16, %v711_v45  ;;  %v691_v9 = vmul.f32 %v1188_v4, %v1455_v35 }
 0x218   : > { %v734_v32 = vadd.f32 %v1533_v16, %v712_v5  ;;  %v692_v40 = vmul.f32 %v1190_v7, %v1459_v38 }
 0x219   : > { %1203 = vrsqrt.f32 %v667_v8  ;;  %1148 = vmatmul.mubr.msk.f32.gmra.mxu1 %vm490_vm1, %v733_v29  ;;  %v713_v51 = vmul.f32 %v1527_v10, %v691_v9 }
 0x21a   : > { %v1192_v11 = vpop.eup %1191  ;;  %1150 = vmatprep.mubr.msk.f32.mxu1 %vm490_vm1, %v734_v32  ;;  %v714_v14 = vmul.f32 %v1527_v10, %v692_v40 }
 0x21b   : > { %v1194_v15 = vpop.eup %1193  ;;  %v735_v17 = vadd.f32 %v1533_v16, %v713_v51  ;;  %v693_v18 = vmul.f32 %v1192_v11, %v1469_v41 }
 0x21c   : > { %v736_v35 = vadd.f32 %v1533_v16, %v714_v14  ;;  %v694_v46 = vmul.f32 %v1194_v15, %v1473_v44 }
 0x21d   : > { %1151 = vmatmul.mubr.msk.f32.gmra.mxu1 %vm490_vm1, %v735_v17  ;;  %v715_v38 = vmul.f32 %v1527_v10, %v693_v18 }
 0x21e   : > { %v1196_v57 = vpop.eup %1195  ;;  %1153 = vmatprep.mubr.msk.f32.mxu1 %vm490_vm1, %v736_v35  ;;  %v716_v19 = vmul.f32 %v1527_v10, %v694_v46 }
 0x21f   : > { %v1198_v21 = vpop.eup %1197  ;;  %v737_v24 = vadd.f32 %v1533_v16, %v715_v38  ;;  %v695_v25 = vmul.f32 %v1196_v57, %v1483_v47 }
 0x220   : > { %v738_v41 = vadd.f32 %v1533_v16, %v716_v19  ;;  %v696_v6 = vmul.f32 %v1198_v21, %v1487_v50 }
 0x221   : > { %1154 = vmatmul.mubr.msk.f32.gmra.mxu1 %vm490_vm1, %v737_v24  ;;  %v717_v44 = vmul.f32 %v1527_v10, %v695_v25 }
 0x222   : > { %v1200_v52 = vpop.eup %1199  ;;  %1156 = vmatprep.mubr.msk.f32.mxu1 %vm490_vm1, %v738_v41  ;;  %v718_v62 = vmul.f32 %v1527_v10, %v696_v6 }
 0x223   : > { %v1202_v63 = vpop.eup %1201  ;;  %v739_v26 = vadd.f32 %v1533_v16, %v717_v44  ;;  %v697_v27 = vmul.f32 %v1200_v52, %v1497_v53 }
 0x224   : > { %v740_v47 = vadd.f32 %v1533_v16, %v718_v62  ;;  %v698_v30 = vmul.f32 %v1202_v63, %v1501_v56 }
 0x225   : > { %1157 = vmatmul.mubr.msk.f32.gmra.mxu1 %vm490_vm1, %v739_v26  ;;  %v719_v50 = vmul.f32 %v1527_v10, %v697_v27 }
 0x226   : > { %v1204_v58 = vpop.eup %1203  ;;  %1159 = vmatprep.mubr.msk.f32.mxu1 %vm490_vm1, %v740_v47  ;;  %v720_v0 = vmul.f32 %v1527_v10, %v698_v30 }
 0x227   : > { %v741_v31 = vadd.f32 %v1533_v16, %v719_v50  ;;  %v699_v36 = vmul.f32 %v1204_v58, %v1511_v59 }
 0x228   : > { %v742_v53 = vadd.f32 %v1533_v16, %v720_v0 }
 0x229   : > { %1160 = vmatmul.mubr.msk.f32.gmra.mxu1 %vm490_vm1, %v741_v31  ;;  %v721_v23 = vmul.f32 %v1527_v10, %v699_v36 }
 0x22a   : > { %1162 = vmatprep.mubr.msk.f32.mxu1 %vm490_vm1, %v742_v53 }
 0x22b   : > { %v743_v56 = vadd.f32 %v1533_v16, %v721_v23 }
 0x22d   : > { %1163 = vmatmul.mubr.msk.f32.gmra.mxu1 %vm490_vm1, %v743_v56 }
 0x2d1   : > { %v1143_v59 = vpop.f32.mrf.mxu1 }
 0x2d2   : > { %v874_v10 = vadd.f32 %v1143_v59, %v1047_v12 }
 0x2d3   : > { %v868_v16 = vpop.f32.mrf.mxu1 }
 0x2d4   : > { %949 = vst.msk [vmem:[%s1606_s25 + $0x8] sm:$0xff] %vm947_vm3, %v874_v10  ;;  %v869_v33 = vadd.f32 %v1047_v12, %v868_v16 }
 0x2d5   : > { %v1146_v37 = vpop.f32.mrf.mxu1 }
 0x2d6   : > { %948 = vst.msk [vmem:[%s1606_s25] sm:$0xff] %vm947_vm3, %v869_v33  ;;  %v884_v13 = vadd.f32 %v1146_v37, %v1047_v12 }
 0x2d7   : > { %v878_v42 = vpop.f32.mrf.mxu1 }
 0x2d8   : > { %951 = vst.msk [vmem:[%s1606_s25 + $0x18] sm:$0xff] %vm947_vm3, %v884_v13  ;;  %v879_v43 = vadd.f32 %v1047_v12, %v878_v42 }
 0x2d9   : > { %v1149_v48 = vpop.f32.mrf.mxu1 }
 0x2da   : > { %950 = vst.msk [vmem:[%s1606_s25 + $0x10] sm:$0xff] %vm947_vm3, %v879_v43  ;;  %v894_v49 = vadd.f32 %v1149_v48, %v1047_v12 }
 0x2db   : > { %v888_v54 = vpop.f32.mrf.mxu1 }
 0x2dc   : > { %953 = vst.msk [vmem:[%s1606_s25 + $0x28] sm:$0xff] %vm947_vm3, %v894_v49  ;;  %v889_v28 = vadd.f32 %v1047_v12, %v888_v54 }
 0x2dd   : > { %v1152_v39 = vpop.f32.mrf.mxu1 }
 0x2de   : > { %952 = vst.msk [vmem:[%s1606_s25 + $0x20] sm:$0xff] %vm947_vm3, %v889_v28  ;;  %v904_v20 = vadd.f32 %v1152_v39, %v1047_v12 }
 0x2df   : > { %v898_v55 = vpop.f32.mrf.mxu1 }
 0x2e0   : > { %955 = vst.msk [vmem:[%s1606_s25 + $0x38] sm:$0xff] %vm947_vm3, %v904_v20  ;;  %v899_v60 = vadd.f32 %v1047_v12, %v898_v55 }
 0x2e1   : > { %v1155_v61 = vpop.f32.mrf.mxu1 }
 0x2e2   : > { %954 = vst.msk [vmem:[%s1606_s25 + $0x30] sm:$0xff] %vm947_vm3, %v899_v60  ;;  %v914_v22 = vadd.f32 %v1155_v61, %v1047_v12 }
 0x2e3   : > { %v908_v1 = vpop.f32.mrf.mxu1 }
 0x2e4   : > { %957 = vst.msk [vmem:[%s1606_s25 + $0x48] sm:$0xff] %vm947_vm3, %v914_v22  ;;  %v909_v2 = vadd.f32 %v1047_v12, %v908_v1 }
 0x2e5   : > { %v1158_v3 = vpop.f32.mrf.mxu1 }
 0x2e6   : > { %956 = vst.msk [vmem:[%s1606_s25 + $0x40] sm:$0xff] %vm947_vm3, %v909_v2  ;;  %v924_v34 = vadd.f32 %v1158_v3, %v1047_v12 }
 0x2e7   : > { %v918_v45 = vpop.f32.mrf.mxu1 }
 0x2e8   : > { %959 = vst.msk [vmem:[%s1606_s25 + $0x58] sm:$0xff] %vm947_vm3, %v924_v34  ;;  %v919_v4 = vadd.f32 %v1047_v12, %v918_v45 }
 0x2e9   : > { %v1161_v5 = vpop.f32.mrf.mxu1 }
 0x2ea   : > { %958 = vst.msk [vmem:[%s1606_s25 + $0x50] sm:$0xff] %vm947_vm3, %v919_v4  ;;  %v934_v7 = vadd.f32 %v1161_v5, %v1047_v12 }
 0x2eb   : > { %v928_v8 = vpop.f32.mrf.mxu1 }
 0x2ec   : > { %961 = vst.msk [vmem:[%s1606_s25 + $0x68] sm:$0xff] %vm947_vm3, %v934_v7  ;;  %v929_v29 = vadd.f32 %v1047_v12, %v928_v8 }
 0x2ed   : > { %v1164_v9 = vpop.f32.mrf.mxu1 }
 0x2ee   : > { %960 = vst.msk [vmem:[%s1606_s25 + $0x60] sm:$0xff] %vm947_vm3, %v929_v29  ;;  %v944_v32 = vadd.f32 %v1164_v9, %v1047_v12 }
 0x2ef   : > { %v938_v40 = vpop.f32.mrf.mxu1 }
 0x2f0   : > { %963 = vst.msk [vmem:[%s1606_s25 + $0x78] sm:$0xff] %vm947_vm3, %v944_v32  ;;  %v939_v51 = vadd.f32 %v1047_v12, %v938_v40 }
 0x2f2   : > { %962 = vst.msk [vmem:[%s1606_s25 + $0x70] sm:$0xff] %vm947_vm3, %v939_v51 }
 0x2f3 PF: > { %s16_s21 = sadd.s32 1, %s1211_s21  }
 0x2f4   : > { %p13_p4 = scmp.ge.s32.totalorder %s16_s21, 4  }
 0x2f6   :  { %15 = sbr.rel (!%p13_p4) target bundleno = 1 (0x1), region = 74 }

</bundles_post_ra>
